<compile_context>
chip_gen: v7x
topology: tpu7x:2x2x1
jax: 0.10.0
libtpu: 0.0.40
codegen_flags: <defaults>
</compile_context>

<pallas_src>
import functools
import math

import jax
import jax.numpy as jnp
from jax.experimental import pallas as pl
from jax.experimental.pallas import tpu as pltpu


# ---------------------------------------------------------------------------
# Stage 1: fused projection.
# ---------------------------------------------------------------------------
def _proj_kernel(x_ref, w_ref, b_ref, h_ref, st_ref, ed_ref, *, fout):
    # x_ref : [Fin, TR]      node features (native channel-major tile)
    # w_ref : [Fin, Fout+2]  fused weight  [W^T | W^T w1^T | W^T w2^T]
    # b_ref : SMEM (2,)      [b1, b2]
    # h_ref : [TR, Fout]     projected features (node-major "values")
    # st_ref: [TR, 1]        source attention logit  (fc1(h))
    # ed_ref: [TR, 1]        target attention logit  (fc2(h))
    xt = jnp.transpose(x_ref[...], (1, 0))                          # [TR, Fin]
    h_aug = jnp.dot(xt, w_ref[...], preferred_element_type=jnp.float32)
    h_ref[...] = h_aug[:, :fout]
    st_ref[...] = h_aug[:, fout:fout + 1] + b_ref[0]
    ed_ref[...] = h_aug[:, fout + 1:fout + 2] + b_ref[1]


# ---------------------------------------------------------------------------
# Stage 2: tiled masked attention with online softmax over key tiles.
# ---------------------------------------------------------------------------
def _attn_kernel(st_ref, ed_ref, h_ref, mask_ref, bias_ref, out_ref,
                 m_sc, l_sc, acc_sc, *, alpha):
    ki = pl.program_id(1)

    @pl.when(ki == 0)
    def _init():
        m_sc[...] = jnp.full_like(m_sc, -1e30)   # finite sentinel (no NaN path)
        l_sc[...] = jnp.zeros_like(l_sc)
        acc_sc[...] = jnp.zeros_like(acc_sc)

    # e[i, j] = leakyrelu(att_st[i] + att_ed[j]) on the (TQ, TK) tile.
    e = st_ref[...] + ed_ref[...]                                   # [TQ, TK]
    e = jnp.maximum(e, alpha * e)                                   # LeakyReLU

    # Sparse row-softmax == masked dense softmax.  Masked entries -> -inf, so
    # exp(e - m_new) is exactly 0 for them (m_new is always finite because the
    # running max is seeded with -1e30), including fully-masked tile rows.
    mask_f = mask_ref[...].astype(jnp.float32)
    e = jnp.where(mask_f > 0.0, e, jnp.float32(-jnp.inf))

    m_prev = m_sc[...]
    m_new = jnp.maximum(m_prev, jnp.max(e, axis=-1, keepdims=True))
    corr = jnp.exp(m_prev - m_new)
    p = jnp.exp(e - m_new)                                          # masked -> 0
    l_sc[...] = corr * l_sc[...] + jnp.sum(p, axis=-1, keepdims=True)
    acc_sc[...] = corr * acc_sc[...] + jnp.dot(
        p, h_ref[...], preferred_element_type=jnp.float32)
    m_sc[...] = m_new

    @pl.when(ki == pl.num_programs(1) - 1)
    def _finalize():
        inv_l = pl.reciprocal(jnp.maximum(l_sc[...], jnp.float32(1e-30)),
                              approx=False)
        ret = acc_sc[...] * inv_l + bias_ref[...]                   # [TQ, Fout]
        ret = jnp.where(ret > 0, ret, jnp.exp(jnp.minimum(ret, 0.0)) - 1.0)
        # Lane-dense store: write [Fout, TQ] so the final [1, Fout, N] result
        # needs no wrapper transpose and stores are full-lane vst.
        out_ref[...] = jnp.transpose(ret, (1, 0))


# ---------------------------------------------------------------------------
# Wrapper
# ---------------------------------------------------------------------------
def sp_attn_head_forward(x_ncn, adj_mask, params, alpha=0.01, tile_n=128):
    """Forward pass of sp_Attn_head (eval mode).

    x_ncn:    [1, Fin, N]  (PyTorch channel-first layout)
    adj_mask: [N, N] adjacency; nonzero == edge (sparse COO materialized dense)
    returns:  [1, Fout, N]
    """
    assert tile_n % 128 == 0, "tile_n must be a multiple of 128"
    w_fc, w1, b1, w2, b2, bias = params
    _, fin, n = x_ncn.shape
    fout = w_fc.shape[0]

    npad = ((n + tile_n - 1) // tile_n) * tile_n

    # Native channel-major features [Fin, N] (no wrapper-side transpose of x).
    x_fn = jnp.squeeze(x_ncn, axis=0).astype(jnp.float32)
    if npad != n:
        x_fn = jnp.pad(x_fn, ((0, 0), (0, npad - n)))

    # Adjacency streamed as int8 (4x less HBM/VMEM than f32 for the N^2 read).
    adj_i8 = (adj_mask != 0).astype(jnp.int8)
    if npad != n:
        adj_i8 = jnp.pad(adj_i8, ((0, npad - n), (0, npad - n)))

    # Fuse fc, fc1, fc2 into a single [Fin, Fout+2] weight.
    w_t = jnp.transpose(w_fc, (1, 0)).astype(jnp.float32)           # [Fin, Fout]
    w_aug = jnp.concatenate(
        [w_t,
         w_t @ w1.reshape(fout, 1).astype(jnp.float32),
         w_t @ w2.reshape(fout, 1).astype(jnp.float32)], axis=1)    # [Fin, Fout+2]
    b12 = jnp.concatenate([b1.reshape(1), b2.reshape(1)]).astype(jnp.float32)
    bias_r = bias.reshape(1, fout).astype(jnp.float32)

    # ---- Stage 1: projection --------------------------------------------
    h, att_st, att_ed = pl.pallas_call(
        functools.partial(_proj_kernel, fout=fout),
        out_shape=(
            jax.ShapeDtypeStruct((npad, fout), jnp.float32),
            jax.ShapeDtypeStruct((npad, 1), jnp.float32),
            jax.ShapeDtypeStruct((npad, 1), jnp.float32),
        ),
        grid=(npad // tile_n,),
        in_specs=[
            pl.BlockSpec((fin, tile_n), lambda r: (0, r)),           # x
            pl.BlockSpec((fin, fout + 2), lambda r: (0, 0)),         # fused W
            pl.BlockSpec(memory_space=pltpu.MemorySpace.SMEM),       # [b1, b2]
        ],
        out_specs=(
            pl.BlockSpec((tile_n, fout), lambda r: (r, 0)),
            pl.BlockSpec((tile_n, 1), lambda r: (r, 0)),
            pl.BlockSpec((tile_n, 1), lambda r: (r, 0)),
        ),
        compiler_params=pltpu.CompilerParams(
            dimension_semantics=("parallel",)),
    )(x_fn, w_aug, b12)

    # Hoisted once: att_ed as a lane-major [1, N] row (tiny N-element op),
    # so the inner attention loop never transposes.
    att_ed_row = jnp.transpose(att_ed, (1, 0))                       # [1, Npad]

    # ---- Stage 2: tiled attention with online softmax --------------------
    tq = tk = tile_n
    out_fn = pl.pallas_call(
        functools.partial(_attn_kernel, alpha=alpha),
        out_shape=jax.ShapeDtypeStruct((fout, npad), jnp.float32),
        grid=(npad // tq, npad // tk),
        in_specs=[
            pl.BlockSpec((tq, 1), lambda qi, ki: (qi, 0)),           # att_st
            pl.BlockSpec((1, tk), lambda qi, ki: (0, ki)),           # att_ed
            pl.BlockSpec((tk, fout), lambda qi, ki: (ki, 0)),        # h (values)
            pl.BlockSpec((tq, tk), lambda qi, ki: (qi, ki)),         # int8 mask
            pl.BlockSpec((1, fout), lambda qi, ki: (0, 0)),          # bias
        ],
        out_specs=pl.BlockSpec((fout, tq), lambda qi, ki: (0, qi)),
        scratch_shapes=[
            pltpu.VMEM((tq, 1), jnp.float32),      # running row max
            pltpu.VMEM((tq, 1), jnp.float32),      # running denominator
            pltpu.VMEM((tq, fout), jnp.float32),   # output accumulator
        ],
        compiler_params=pltpu.CompilerParams(
            dimension_semantics=("parallel", "arbitrary")),
    )(att_st, att_ed_row, h, adj_i8, bias_r)

    return out_fn[None, :, :n]                                       # [1, Fout, N]


# ---------------------------------------------------------------------------
# Pure-JAX reference (mirrors the PyTorch forward, eval mode).
# ---------------------------------------------------------------------------
def _reference(x_ncn, adj_mask, params, alpha=0.01):
    w_fc, w1, b1, w2, b2, bias = params
    x = jnp.transpose(jnp.squeeze(x_ncn, axis=0), (1, 0))            # [N, Fin]
    h = x @ w_fc.T                                                   # [N, Fout]
    att_st = h @ w1.reshape(-1, 1) + b1                              # [N, 1]
    att_ed = h @ w2.reshape(-1, 1) + b2                              # [N, 1]
    e = att_st + att_ed.T
    e = jnp.where(e > 0, e, alpha * e)
    e_m = jnp.where(adj_mask > 0, e, -1e30)
    p = jnp.exp(e_m - jnp.max(e_m, axis=-1, keepdims=True)) * adj_mask
    coefs = p / jnp.maximum(jnp.sum(p, axis=-1, keepdims=True), 1e-30)
    ret = coefs @ h + bias
    ret = jnp.where(ret > 0, ret, jnp.exp(jnp.minimum(ret, 0.0)) - 1.0)
    return jnp.transpose(ret, (1, 0))[None, :, :]


def init_params(key, input_dim, out_dim):
    """Deterministic init mirroring sp_Attn_head.reset_parameters()."""
    k_fc, k1w, k1b, k2w, k2b = jax.random.split(key, 5)
    stdv = 1.0 / math.sqrt(input_dim)
    w_fc = jax.random.uniform(k_fc, (out_dim, input_dim), jnp.float32, -stdv, stdv)
    stdv1 = 1.0 / math.sqrt(out_dim)
    w1 = jax.random.uniform(k1w, (1, out_dim), jnp.float32, -stdv1, stdv1)
    b1 = jax.random.uniform(k1b, (1,), jnp.float32, -stdv1, stdv1)
    w2 = jax.random.uniform(k2w, (1, out_dim), jnp.float32, -stdv1, stdv1)
    b2 = jax.random.uniform(k2b, (1,), jnp.float32, -stdv1, stdv1)
    bias = jnp.zeros((out_dim,), jnp.float32)
    return (w_fc, w1, b1, w2, b2, bias)


if __name__ == "__main__":
    N, FIN, FOUT = 256, 32, 16       # grid (2,2): exercises the online softmax
    key = jax.random.PRNGKey(0)
    k_x, k_adj, k_p = jax.random.split(key, 3)

    # x in PyTorch layout [1, ft_size, num_nodes]
    x = jax.random.normal(k_x, (1, FIN, N), jnp.float32)

    # Random sparse adjacency (with self-loops) as a dense {0,1} mask.
    adj_mask = (jax.random.uniform(k_adj, (N, N)) < 0.10).astype(jnp.float32)
    adj_mask = jnp.maximum(adj_mask, jnp.eye(N, dtype=jnp.float32))

    params = init_params(k_p, FIN, FOUT)

    out = sp_attn_head_forward(x, adj_mask, params, alpha=0.01)
    out = jax.block_until_ready(out)

    ref = _reference(x, adj_mask, params, alpha=0.01)
    assert out.shape == (1, FOUT, N)
    assert jnp.allclose(out, ref, rtol=1e-4, atol=1e-4), "mismatch vs reference"

    print("KERNEL_OK")
</pallas_src>

<mosaic_0001>
module attributes {stable_mosaic.version = 11 : i64} {
  func.func @_proj_kernel(%arg0: i32, %arg1: memref<32x128xf32, #tpu.memory_space<vmem>>, %arg2: memref<32x18xf32, #tpu.memory_space<vmem>>, %arg3: memref<2xf32, #tpu.memory_space<smem>>, %arg4: memref<128x16xf32, #tpu.memory_space<vmem>>, %arg5: memref<128x1xf32, #tpu.memory_space<vmem>>, %arg6: memref<128x1xf32, #tpu.memory_space<vmem>>) attributes {dimension_semantics = [#tpu.dimension_semantics<parallel>], iteration_bounds = array<i64: 2>, scalar_prefetch = 0 : i64, scratch_operands = 0 : i64, tpu.core_type = #tpu.core_type<tc>, window_params = [{transform_indices = @transform_0, window_bounds = array<i64: 32, 128>}, {pipeline_mode = #tpu.pipeline_mode<synchronous>, transform_indices = @transform_1, window_bounds = array<i64: 32, 18>}, {transform_indices = @transform_2, window_bounds = array<i64: 2>}, {transform_indices = @transform_3, window_bounds = array<i64: 128, 16>}, {transform_indices = @transform_4, window_bounds = array<i64: 128, 1>}, {transform_indices = @transform_5, window_bounds = array<i64: 128, 1>}]} {
    %c0 = arith.constant 0 : index
    %c0_0 = arith.constant 0 : index
    %0 = vector.load %arg1[%c0, %c0_0] : memref<32x128xf32, #tpu.memory_space<vmem>>, vector<32x128xf32>
    %1 = tpu.transpose %0, [1, 0] : vector<32x128xf32> -> vector<128x32xf32>
    %c0_1 = arith.constant 0 : index
    %c0_2 = arith.constant 0 : index
    %2 = vector.load %arg2[%c0_1, %c0_2] : memref<32x18xf32, #tpu.memory_space<vmem>>, vector<32x18xf32>
    %cst = arith.constant dense<0.000000e+00> : vector<128x18xf32>
    %3 = tpu.matmul %1, %2, %cst {dimension_numbers = #tpu.dot_dimension_numbers<[1], [0], [0], [1], [0, 0, 1, 1], [], []>} : vector<128x32xf32>, vector<32x18xf32>, vector<128x18xf32> -> vector<128x18xf32>
    %4 = vector.extract_strided_slice %3 {offsets = [0, 0], sizes = [128, 16], strides = [1, 1]} : vector<128x18xf32> to vector<128x16xf32>
    %c0_3 = arith.constant 0 : index
    %c0_4 = arith.constant 0 : index
    %5 = vector.load %arg4[%c0_3, %c0_4] : memref<128x16xf32, #tpu.memory_space<vmem>>, vector<128x16xf32>
    tpu.vector_store %arg4[%c0_3, %c0_4], %4 {strides = array<i32>} : memref<128x16xf32, #tpu.memory_space<vmem>>, vector<128x16xf32>,
    %6 = vector.extract_strided_slice %3 {offsets = [0, 16], sizes = [128, 1], strides = [1, 1]} : vector<128x18xf32> to vector<128x1xf32>
    %c0_5 = arith.constant 0 : index
    %7 = memref.load %arg3[%c0_5] : memref<2xf32, #tpu.memory_space<smem>>
    %8 = vector.broadcast %7 : f32 to vector<128x1xf32>
    %9 = arith.addf %6, %8 : vector<128x1xf32>
    %c0_6 = arith.constant 0 : index
    %c0_7 = arith.constant 0 : index
    %10 = vector.load %arg5[%c0_6, %c0_7] : memref<128x1xf32, #tpu.memory_space<vmem>>, vector<128x1xf32>
    tpu.vector_store %arg5[%c0_6, %c0_7], %9 {strides = array<i32>} : memref<128x1xf32, #tpu.memory_space<vmem>>, vector<128x1xf32>,
    %11 = vector.extract_strided_slice %3 {offsets = [0, 17], sizes = [128, 1], strides = [1, 1]} : vector<128x18xf32> to vector<128x1xf32>
    %c1 = arith.constant 1 : index
    %12 = memref.load %arg3[%c1] : memref<2xf32, #tpu.memory_space<smem>>
    %13 = vector.broadcast %12 : f32 to vector<128x1xf32>
    %14 = arith.addf %11, %13 : vector<128x1xf32>
    %c0_8 = arith.constant 0 : index
    %c0_9 = arith.constant 0 : index
    %15 = vector.load %arg6[%c0_8, %c0_9] : memref<128x1xf32, #tpu.memory_space<vmem>>, vector<128x1xf32>
    tpu.vector_store %arg6[%c0_8, %c0_9], %14 {strides = array<i32>} : memref<128x1xf32, #tpu.memory_space<vmem>>, vector<128x1xf32>,
    return
  }
  func.func @transform_0(%arg0: i32) -> (i32, i32) {
    %c0_i32 = arith.constant 0 : i32
    %c0_i32_0 = arith.constant 0 : i32
    return %c0_i32, %arg0 : i32, i32
  }
  func.func @transform_1(%arg0: i32) -> (i32, i32) {
    %c0_i32 = arith.constant 0 : i32
    %c0_i32_0 = arith.constant 0 : i32
    %c0_i32_1 = arith.constant 0 : i32
    return %c0_i32, %c0_i32_0 : i32, i32
  }
  func.func @transform_2(%arg0: i32) -> i32 {
    %c0_i32 = arith.constant 0 : i32
    %c0_i32_0 = arith.constant 0 : i32
    return %c0_i32 : i32
  }
  func.func @transform_3(%arg0: i32) -> (i32, i32) {
    %c0_i32 = arith.constant 0 : i32
    %c0_i32_0 = arith.constant 0 : i32
    return %arg0, %c0_i32 : i32, i32
  }
  func.func @transform_4(%arg0: i32) -> (i32, i32) {
    %c0_i32 = arith.constant 0 : i32
    %c0_i32_0 = arith.constant 0 : i32
    return %arg0, %c0_i32 : i32, i32
  }
  func.func @transform_5(%arg0: i32) -> (i32, i32) {
    %c0_i32 = arith.constant 0 : i32
    %c0_i32_0 = arith.constant 0 : i32
    return %arg0, %c0_i32 : i32, i32
  }
}

</mosaic_0001>

<bundles_post_ra>
// kernel: tpu_custom_call.1
= control target key start
LH: loop header
LB: loop body
LE: loop exit
PB: predicated region body
PF: predicated region fallthrough
CT: control target
= control target key end

     0   :  { %11 = vsyncpa [#allocation3], 0  ;;  %s1503_s0 = inlined_call_operand.hbm [shape: f32[32,256], index: 0, kind: input, shape index: {}]   ;;  %s1504_s1 = inlined_call_operand.vmem [shape: f32[32,18], index: 1, kind: input, shape index: {}]   ;;  %s1505_s2 = inlined_call_operand.vmem [shape: f32[2], index: 2, kind: input, shape index: {}]   ;;  %s1506_s3 = inlined_call_operand.vmem [shape: f32[256,16], index: 3, kind: output, shape index: {0}]   ;;  %s1507_s4 = inlined_call_operand.vmem [shape: f32[256,1], index: 4, kind: output, shape index: {1}]   ;;  %s1508_s5 = inlined_call_operand.vmem [shape: f32[256,1], index: 5, kind: output, shape index: {2}]  }
   0x1   :  { %13 = vsyncpa [#allocation3 + $0x1], 0 }
   0x2   :  { %14 = vsyncpa [#allocation4], 0  ;;  %s1158_s18 = smov 0   ;;  %s1160_s19 = smov 0  }
   0x3   :  { %s1162_s20 = smov 0   ;;  %s1164_s21 = smov 0  }
   0x4 LB: > { %s881_s22 = sadd.s32 4294967295, %s1119_s21   ;;  %s1178_s23 = sadd.s32 1, %s1119_s21   ;;  %s1119_s21 = sphi %s1164_s21, %s1521_s21   ;;  %s1115_s20 = sphi %s1162_s20, %s1520_s20   ;;  %s1111_s19 = sphi %s1160_s19, %s1519_s19   ;;  %s1107_s18 = sphi %s1158_s18, %s1518_s18  }
   0x5   : > { %s24_s24 = ssub.s32 %s1119_s21, %s1178_s23  ;;  %s27_s25 = sadd.s32 1, %s1115_s20 }
   0x6   : > { %p25_p0 = scmp.eq.s32.totalorder %s24_s24, 0  ;;  %p34_p1 = scmp.ne.s32.totalorder %s1115_s20, %s1111_s19 }
   0x7   : > { %p35_p2 = scmp.eq.s32.totalorder %s1119_s21, 0  ;;  %p40_p3 = scmp.ne.s32.totalorder %s1111_s19, %s1107_s18 }
   0x8   : > { %s1188_s26 = scalar_select %p25_p0, %s1115_s20, %s27_s25  }
   0x9   : > { %p36_p4 = por %p35_p2, %p34_p1  ;;  %p1192_p5 = scmp.eq.s32.totalorder %s881_s22, 0 }
   0xa   : > { %p883_p6 = scmp.ge.s32.totalorder %s1119_s21, 1  ;;  %p171_p7 = scmp.lt.s32.totalorder %s1119_s21, 3 }
   0xb   : > { %p1200_p8 = por %p1192_p5, %p40_p3  ;;  %s187_s7 = sshll.u32 %s1505_s2, 4  ;;  %s188_s7 = int_to_ptr.vmem [resolvable:$true] %s187_s7 }
   0xc   : > { %p1204_p9 = pnand %p883_p6, %p171_p7  ;;  %p995_p11 = scmp.lt.s32.totalorder %s1119_s21, 2 }
   0xd   : > { %s1512_s28 = scalar_select %p1200_p8, 1, 0 }
   0xe   : > { %s1513_s29 = scalar_select %p1204_p9, 1, 0 }
   0xf   : > { %p986_p10 = pneg %p1204_p9  ;;  %s198_s8 = sand.u32 1, %s1115_s20  }
  0x10   : > { %p1221_p13 = pnand %p995_p11, %p36_p4  ;;  %s886_s11 = sshll.u32 %s198_s8, 5 }
  0x11   : > { %p1217_p12 = pnand %p986_p10, %p1192_p5  ;;  %s1036_s12 = scalar_lea.vmem %s188_s7, 16 }
  0x12   : > { %p1037_p0 = scmp.ne.s32.totalorder %s188_s7, %s1036_s12  ;;  %p1044_p6 = scmp.lt.s32.totalorder %s188_s7, %s188_s7 }
  0x13   : > { %p1038_p1 = pneg %p1217_p12  ;;  %p1045_p7 = scmp.lt.s32.totalorder %s1036_s12, %s1036_s12 }
  0x15   : > { %p1039_p2 = pnand %p1038_p1, %p1037_p0  ;;  %p1046_p8 = por %p1045_p7, %p1044_p6 }
  0x17   : > { %p1040_p3 = pneg %p1039_p2 }
  0x19   : > { %p1047_p9 = pnand %p1046_p8, %p1040_p3 }
  0x1b   : > { %1050 = shalt.err (!%p1047_p9)
}
  0x1c   : > { %s1121_s13 = smov [#allocation5]   ;;  %s887_s14 = sshll.u32 %s1119_s21, 7 }
  0x1d   : > { %989 = dma.vmem_to_smem (!%p1217_p12), %s188_s7, 16, %s1121_s13, [#allocation4]  }
  0x1e   : > { %s1233_s17 = scalar_lea.hbm %s1503_s0, %s887_s14  ;;  %s202_s18 = scalar_lea.vmem [#allocation2], %s886_s11 }
  0x1f   : > { %s208_s24 = sshll.u32 %s202_s18, 4  ;;  %s1237_s25 = scalar_lea.sflag [#allocation3], %s198_s8  ;;  %s1235_s24 = int_to_ptr.vmem [resolvable:$true] %s208_s24 }
  0x20   : > { %s1051_s30 = scalar_lea.hbm %s1233_s17, 512  ;;  %p1053_p8 = pneg %p1221_p13 }
  0x21   : > { %p1052_p4 = scmp.ne.s32.totalorder %s1233_s17, %s1051_s30  ;;  %s1056_s9 = scalar_lea.hbm %s1503_s0, 1024 }
  0x22   : > { %p1057_p11 = scmp.lt.u32.totalorder %s1233_s17, %s1503_s0  ;;  %p1058_p12 = scmp.lt.u32.totalorder %s1056_s9, %s1051_s30 }
  0x23   : > { %p1054_p9 = pnand %p1053_p8, %p1052_p4  ;;  %p1060_p1 = scmp.lt.u32.totalorder %s1051_s30, %s1233_s17 }
  0x24   : > { %p1059_p0 = por %p1058_p12, %p1057_p11 }
  0x25   : > { %p1055_p10 = pneg %p1054_p9 }
  0x26   : > { %p1061_p2 = por %p1060_p1, %p1059_p0 }
  0x28   : > { %p1062_p3 = pnand %p1061_p2, %p1055_p10 }
  0x2a   : > { %1065 = shalt.err (!%p1062_p3)
}
  0x2b   : > { %s1066_s8 = scalar_lea.vmem %s1235_s24, 512  ;;  %s1122_s11 = smov [#allocation2]  }
  0x2c   : > { %p1067_p6 = scmp.ne.s32.totalorder %s1235_s24, %s1066_s8  ;;  %s1071_s14 = sshll.u32 %s1122_s11, 4  ;;  %s1072_s14 = int_to_ptr.vmem [resolvable:$false] %s1071_s14 }
  0x2d   : > { %s1073_s15 = scalar_lea.vmem %s1072_s14, 1024  ;;  %p1074_p9 = scmp.lt.s32.totalorder %s1235_s24, %s1072_s14 }
  0x2e   : > { %p1069_p7 = pnand %p1067_p6, %p1053_p8  ;;  %p1075_p11 = scmp.lt.s32.totalorder %s1073_s15, %s1066_s8 }
  0x30   : > { %p1070_p4 = pneg %p1069_p7  ;;  %p1076_p12 = por %p1075_p11, %p1074_p9 }
  0x32   : > { %p1077_p0 = pnand %p1076_p12, %p1070_p4 }
  0x34   : > { %1080 = shalt.err (!%p1077_p0)
}
  0x35   : > { %s1123_s16 = smov 256   ;;  %s1124_s18 = smov 128  }
  0x36   : > { %s1125_s30 = smov 8   ;;  %p1516_p8 = scmp.ne.s32.totalorder %s1513_s29, 0 }
  0x37   : > { %993 = dma.hbm_to_vmem [thread:$0]  (!%p1221_p13), %s1233_s17, 512, %s1235_s24, %s1237_s25, %s1123_s16, %s1124_s18, %s1125_s30  }
  0x38   : > { %220 = sbr.rel (%p1516_p8) target bundleno = 644 (0x284), region = 32  ;;  %s222_s6 = sand.u32 (!%p1516_p8), 1, %s1111_s19  }
  0x39   : > { %s889_s7 = sshll.u32 (!%p1516_p8), %s222_s6, 5  ;;  %s223_s9 = scalar_lea.sflag (!%p1516_p8), [#allocation3], %s222_s6 }
  0x3a   : > { %s226_s12 = scalar_lea.vmem (!%p1516_p8), [#allocation2], %s889_s7  ;;  %p1517_p10 = scmp.ne.s32.totalorder (!%p1516_p8), %s1512_s28, 0 }
  0x3f   : > { %1098 = dma.done.wait (%p1517_p10), %s223_s9, 512  }
  0x40   : > { %1100 = vsyncadd (%p1517_p10), %s223_s9, 4294966784 }
  0x41   : > { %1102 = dma.done.wait (%p1192_p5), [#allocation4], 16  }
  0x42   : > { %1104 = vsyncadd (%p1192_p5), [#allocation4], 4294967280 }
  0x43   : > { %235 = sfence }
  0x44   : > { %v286_v0 = vld [vmem:[%s226_s12] sm:$0xff]  ;;  %v323_v2 = vld [vmem:[%s1504_s1 + $0x8] sm:$0xff]  ;;  %v324_v5 = vld [vmem:[%s1504_s1 + $0x10] sm:$0xff]  ;;  %vm326_vm0 = vcmask 261120   ;;  %s891_s8 = sshll.u32 %s881_s22, 4  ;;  %s537_s11 = sld [smem:[#allocation5]] }
  0x45   : > { %290 = vxpose.xlu0.b32.start [1/4] (short) %v286_v0, 128  ;;  %v322_v1 = vld [vmem:[%s1504_s1] sm:$0xff]  ;;  %v287_v3 = vld [vmem:[%s226_s12 + $0x8] sm:$0xff]  ;;  %v325_v6 = vld [vmem:[%s1504_s1 + $0x18] sm:$0xff]  ;;  %p269_p5 = scmp.lt.s32.totalorder %s891_s8, 31  ;;  %s913_s14 = sld [smem:[#allocation5 + $0x1]]  ;;  %vm520_vm1 = vcmask 130048  }
  0x46   : > { %v968_v4 = vpack.c.bf16 %v323_v2, %v322_v1  ;;  %v972_v7 = vpack.c.bf16 %v325_v6, %v324_v5  ;;  %v288_v8 = vld [vmem:[%s226_s12 + $0x10] sm:$0xff]  ;;  %v289_v9 = vld [vmem:[%s226_s12 + $0x18] sm:$0xff]  ;;  %s1126_s21 = smov 112   ;;  %s1127_s22 = smov 111   ;;  %vm619_vm2 = vcmask 7168  }
  0x47   : > { %s1523_s8 = smov (!%p269_p5, %s891_s8), 31 }
  0x48   : > { %969 = vmatprep.subr.bf16.mxu0 %v968_v4  ;;  %976 = vmatprep.subr.bf16.mxu1 %v968_v4  ;;  %s1306_s15 = sshll.u32 %s1523_s8, 3 }
  0x49   : > { %291 = vxpose.xlu0.b32.cont [2/4] (short) %v287_v3, 128  ;;  %971 = vmatpush3.bf16.msra.mxu0 %v968_v4  ;;  %s1312_s30 = scalar_lea.vmem %s1506_s3, %s1306_s15  ;;  %s1418_s9 = scalar_lea.vmem %s1507_s4, %s1306_s15 }
  0x4a   : > { %973 = vmatprep.subr.bf16.mxu0 %v972_v7  ;;  %978 = vmatpush3.bf16.msra.mxu1 %v968_v4  ;;  %v1314_v26 = vstv %s537_s11  ;;  %s1426_s10 = scalar_lea.vmem %s1508_s5, %s1306_s15 }
  0x4b   : > { %977 = vmatprep.subr.bf16.mxu1 %v972_v7  ;;  %v1319_v30 = vstv %s913_s14 }
  0x4d   : > { %292 = vxpose.xlu0.b32.cont [3/4] (short) %v288_v8, 128  ;;  %975 = vmatpush3.bf16.msra.mxu0 %v972_v7 }
  0x4e   : > { %979 = vmatpush3.bf16.msra.mxu1 %v972_v7 }
  0x51   : > { %293 = vxpose.xlu0.b32.end [4/4] (short) %v289_v9, 128 }
  0xc5   : > { %v306_v10 = vpop.trf.xlu0 }
  0xc6   : > { %944 = vmatprep.mubr.msk.f32.mxu0 %vm326_vm0, %v306_v10 }
  0xc9   : > { %v307_v11 = vpop.trf.xlu0 }
  0xca   : > { %945 = vmatmul.mubr.msk.f32.vlgmr.msra.gmra.mrb[0].mxu0 %vm326_vm0, %v307_v11 }
  0xcd   : > { %v308_v12 = vpop.trf.xlu0 }
  0xce   : > { %947 = vmatprep.mubr.msk.f32.mxu0 %vm326_vm0, %v308_v12 }
  0xd1   : > { %v309_v13 = vpop.trf.xlu0 }
  0xd2   : > { %948 = vmatmul.mubr.msk.f32.gmra.mrb[2].mxu0 %vm326_vm0, %v309_v13 }
  0xd5   : > { %v310_v14 = vpop.trf.xlu0 }
  0xd6   : > { %950 = vmatprep.mubr.msk.f32.mxu0 %vm326_vm0, %v310_v14 }
  0xd9   : > { %v311_v15 = vpop.trf.xlu0 }
  0xda   : > { %951 = vmatmul.mubr.msk.f32.gmra.mrb[4].mxu0 %vm326_vm0, %v311_v15 }
  0xdd   : > { %v312_v16 = vpop.trf.xlu0 }
  0xde   : > { %953 = vmatprep.mubr.msk.f32.mxu0 %vm326_vm0, %v312_v16 }
  0xe1   : > { %v313_v17 = vpop.trf.xlu0 }
  0xe2   : > { %954 = vmatmul.mubr.msk.f32.gmra.mrb[6].mxu0 %vm326_vm0, %v313_v17 }
  0xe5   : > { %v314_v18 = vpop.trf.xlu0 }
  0xe6   : > { %956 = vmatprep.mubr.msk.f32.mxu1 %vm326_vm0, %v314_v18 }
  0xe9   : > { %v315_v19 = vpop.trf.xlu0 }
  0xea   : > { %957 = vmatmul.mubr.msk.f32.vlgmr.msra.gmra.mrb[0].mxu1 %vm326_vm0, %v315_v19 }
  0xed   : > { %v316_v20 = vpop.trf.xlu0 }
  0xee   : > { %959 = vmatprep.mubr.msk.f32.mxu1 %vm326_vm0, %v316_v20 }
  0xf1   : > { %v317_v21 = vpop.trf.xlu0 }
  0xf2   : > { %960 = vmatmul.mubr.msk.f32.gmra.mrb[2].mxu1 %vm326_vm0, %v317_v21 }
  0xf5   : > { %v318_v22 = vpop.trf.xlu0 }
  0xf6   : > { %962 = vmatprep.mubr.msk.f32.mxu1 %vm326_vm0, %v318_v22 }
  0xf9   : > { %v319_v23 = vpop.trf.xlu0 }
  0xfa   : > { %963 = vmatmul.mubr.msk.f32.gmra.mrb[4].mxu1 %vm326_vm0, %v319_v23 }
  0xfd   : > { %v320_v24 = vpop.trf.xlu0 }
  0xfe   : > { %965 = vmatprep.mubr.msk.f32.mxu1 %vm326_vm0, %v320_v24 }
 0x101   : > { %v321_v25 = vpop.trf.xlu0 }
 0x102   : > { %966 = vmatmul.mubr.msk.f32.gmra.mrb[6].mxu1 %vm326_vm0, %v321_v25 }
 0x19d   : > { %v946_v27 = vpop.f32.mrb[0].mxu0 }
 0x19e   : > { %522 = vst.msk [vmem:[%s1312_s30 + $0x8] sm:$0xff] %vm520_vm1, %v946_v27  ;;  %v441_v28 = vpop.f32.mrb[1].mxu0  ;;  %v540_v29 = vadd.f32 %v946_v27, %v1314_v26  ;;  %v639_v31 = vadd.f32 %v946_v27, %v1319_v30 }
 0x19f   : > { %521 = vst.msk [vmem:[%s1312_s30] sm:$0xff] %vm520_vm1, %v441_v28  ;;  %v539_v33 = vadd.f32 %v1314_v26, %v441_v28  ;;  %v638_v35 = vadd.f32 %v1319_v30, %v441_v28 }
 0x1a0   : > { %573 = vrot.lane.b32.xlu1 %v540_v29, %s1126_s21 }
 0x1a4   : > { %672 = vrot.lane.b32.xlu1 %v639_v31, %s1127_s22 }
 0x1a5   : > { %v949_v32 = vpop.f32.mrb[2].mxu0 }
 0x1a6   : > { %524 = vst.msk [vmem:[%s1312_s30 + $0x18] sm:$0xff] %vm520_vm1, %v949_v32  ;;  %v451_v34 = vpop.f32.mrb[3].mxu0  ;;  %v542_v36 = vadd.f32 %v949_v32, %v1314_v26  ;;  %v641_v40 = vadd.f32 %v949_v32, %v1319_v30 }
 0x1a7   : > { %523 = vst.msk [vmem:[%s1312_s30 + $0x10] sm:$0xff] %vm520_vm1, %v451_v34  ;;  %v541_v42 = vadd.f32 %v1314_v26, %v451_v34  ;;  %v640_v44 = vadd.f32 %v1319_v30, %v451_v34 }
 0x1a8   : > { %571 = vrot.lane.b32.xlu1 %v539_v33, %s1126_s21 }
 0x1ac   : > { %670 = vrot.lane.b32.xlu1 %v638_v35, %s1127_s22 }
 0x1ad   : > { %v952_v37 = vpop.f32.mrb[4].mxu0 }
 0x1ae   : > { %526 = vst.msk [vmem:[%s1312_s30 + $0x28] sm:$0xff] %vm520_vm1, %v952_v37  ;;  %v461_v38 = vpop.f32.mrb[5].mxu0  ;;  %v544_v45 = vadd.f32 %v952_v37, %v1314_v26  ;;  %v643_v50 = vadd.f32 %v952_v37, %v1319_v30 }
 0x1af   : > { %525 = vst.msk [vmem:[%s1312_s30 + $0x20] sm:$0xff] %vm520_vm1, %v461_v38  ;;  %v543_v39 = vadd.f32 %v1314_v26, %v461_v38  ;;  %v642_v52 = vadd.f32 %v1319_v30, %v461_v38 }
 0x1b0   : > { %577 = vrot.lane.b32.xlu1 %v542_v36, %s1126_s21 }
 0x1b1   : > { %579 = vrot.lane.b32.xlu0 %v543_v39, %s1126_s21 }
 0x1b4   : > { %676 = vrot.lane.b32.xlu1 %v641_v40, %s1127_s22 }
 0x1b5   : > { %v955_v41 = vpop.f32.mrb[6].mxu0 }
 0x1b6   : > { %528 = vst.msk [vmem:[%s1312_s30 + $0x38] sm:$0xff] %vm520_vm1, %v955_v41  ;;  %v471_v43 = vpop.f32.mrb[7].mxu0  ;;  %v546_v58 = vadd.f32 %v955_v41, %v1314_v26  ;;  %v645_v60 = vadd.f32 %v955_v41, %v1319_v30 }
 0x1b7   : > { %527 = vst.msk [vmem:[%s1312_s30 + $0x30] sm:$0xff] %vm520_vm1, %v471_v43  ;;  %v545_v2 = vadd.f32 %v1314_v26, %v471_v43  ;;  %v644_v4 = vadd.f32 %v1319_v30, %v471_v43 }
 0x1b8   : > { %575 = vrot.lane.b32.xlu1 %v541_v42, %s1126_s21 }
 0x1bc   : > { %674 = vrot.lane.b32.xlu1 %v640_v44, %s1127_s22 }
 0x1bd   : > { %v958_v46 = vpop.f32.mrb[0].mxu1 }
 0x1be   : > { %530 = vst.msk [vmem:[%s1312_s30 + $0x48] sm:$0xff] %vm520_vm1, %v958_v46  ;;  %v481_v47 = vpop.f32.mrb[1].mxu1  ;;  %v548_v10 = vadd.f32 %v958_v46, %v1314_v26  ;;  %v647_v11 = vadd.f32 %v958_v46, %v1319_v30 }
 0x1bf   : > { %529 = vst.msk [vmem:[%s1312_s30 + $0x40] sm:$0xff] %vm520_vm1, %v481_v47  ;;  %v547_v48 = vadd.f32 %v1314_v26, %v481_v47  ;;  %v646_v49 = vadd.f32 %v1319_v30, %v481_v47 }
 0x1c0   : > { %581 = vrot.lane.b32.xlu1 %v544_v45, %s1126_s21 }
 0x1c4   : > { %680 = vrot.lane.b32.xlu1 %v643_v50, %s1127_s22 }
 0x1c5   : > { %v961_v51 = vpop.f32.mrb[2].mxu1 }
 0x1c6   : > { %532 = vst.msk [vmem:[%s1312_s30 + $0x58] sm:$0xff] %vm520_vm1, %v961_v51  ;;  %v550_v53 = vadd.f32 %v961_v51, %v1314_v26  ;;  %v649_v54 = vadd.f32 %v961_v51, %v1319_v30  ;;  %v491_v55 = vpop.f32.mrb[3].mxu1 }
 0x1c7   : > { %531 = vst.msk [vmem:[%s1312_s30 + $0x50] sm:$0xff] %vm520_vm1, %v491_v55  ;;  %v549_v56 = vadd.f32 %v1314_v26, %v491_v55  ;;  %v648_v57 = vadd.f32 %v1319_v30, %v491_v55 }
 0x1c8   : > { %678 = vrot.lane.b32.xlu1 %v642_v52, %s1127_s22 }
 0x1cc   : > { %585 = vrot.lane.b32.xlu1 %v546_v58, %s1126_s21 }
 0x1cd   : > { %v964_v59 = vpop.f32.mrb[4].mxu1 }
 0x1ce   : > { %534 = vst.msk [vmem:[%s1312_s30 + $0x68] sm:$0xff] %vm520_vm1, %v964_v59  ;;  %v552_v61 = vadd.f32 %v964_v59, %v1314_v26  ;;  %v651_v62 = vadd.f32 %v964_v59, %v1319_v30  ;;  %v501_v63 = vpop.f32.mrb[5].mxu1 }
 0x1cf   : > { %533 = vst.msk [vmem:[%s1312_s30 + $0x60] sm:$0xff] %vm520_vm1, %v501_v63  ;;  %v551_v0 = vadd.f32 %v1314_v26, %v501_v63  ;;  %v650_v1 = vadd.f32 %v1319_v30, %v501_v63 }
 0x1d0   : > { %684 = vrot.lane.b32.xlu1 %v645_v60, %s1127_s22 }
 0x1d1   : > { %694 = vrot.lane.b32.xlu0 %v650_v1, %s1127_s22 }
 0x1d4   : > { %583 = vrot.lane.b32.xlu1 %v545_v2, %s1126_s21 }
 0x1d5   : > { %v967_v3 = vpop.f32.mrb[6].mxu1 }
 0x1d6   : > { %536 = vst.msk [vmem:[%s1312_s30 + $0x78] sm:$0xff] %vm520_vm1, %v967_v3  ;;  %v554_v5 = vadd.f32 %v967_v3, %v1314_v26  ;;  %v653_v6 = vadd.f32 %v967_v3, %v1319_v30  ;;  %v511_v7 = vpop.f32.mrb[7].mxu1 }
 0x1d7   : > { %535 = vst.msk [vmem:[%s1312_s30 + $0x70] sm:$0xff] %vm520_vm1, %v511_v7  ;;  %v553_v8 = vadd.f32 %v1314_v26, %v511_v7  ;;  %v652_v9 = vadd.f32 %v1319_v30, %v511_v7 }
 0x1d8   : > { %682 = vrot.lane.b32.xlu1 %v644_v4, %s1127_s22 }
 0x1d9   : > { %698 = vrot.lane.b32.xlu0 %v652_v9, %s1127_s22 }
 0x1dc   : > { %589 = vrot.lane.b32.xlu1 %v548_v10, %s1126_s21 }
 0x1e0   : > { %688 = vrot.lane.b32.xlu1 %v647_v11, %s1127_s22 }
 0x1e4   : > { %587 = vrot.lane.b32.xlu1 %v547_v48, %s1126_s21 }
 0x1e8   : > { %686 = vrot.lane.b32.xlu1 %v646_v49, %s1127_s22 }
 0x1ec   : > { %593 = vrot.lane.b32.xlu1 %v550_v53, %s1126_s21 }
 0x1f0   : > { %692 = vrot.lane.b32.xlu1 %v649_v54, %s1127_s22 }
 0x1f4   : > { %591 = vrot.lane.b32.xlu1 %v549_v56, %s1126_s21 }
 0x1f8   : > { %690 = vrot.lane.b32.xlu1 %v648_v57, %s1127_s22 }
 0x1fc   : > { %597 = vrot.lane.b32.xlu1 %v552_v61, %s1126_s21 }
 0x200   : > { %696 = vrot.lane.b32.xlu1 %v651_v62, %s1127_s22 }
 0x204   : > { %595 = vrot.lane.b32.xlu1 %v551_v0, %s1126_s21 }
 0x208   : > { %601 = vrot.lane.b32.xlu1 %v554_v5, %s1126_s21 }
 0x20c   : > { %599 = vrot.lane.b32.xlu1 %v553_v8, %s1126_s21 }
 0x210   : > { %700 = vrot.lane.b32.xlu1 %v653_v6, %s1127_s22 }
 0x212   : > { %v574_v12 = vpop.permute.xlu1 %573 }
 0x213   : > { %621 = vst.msk [vmem:[%s1418_s9 + $0x8] sm:$0xff] %vm619_vm2, %v574_v12 }
 0x216   : > { %v673_v13 = vpop.permute.xlu1 %672 }
 0x217   : > { %719 = vst.msk [vmem:[%s1426_s10 + $0x8] sm:$0xff] %vm619_vm2, %v673_v13 }
 0x21a   : > { %v572_v14 = vpop.permute.xlu1 %571 }
 0x21b   : > { %620 = vst.msk [vmem:[%s1418_s9] sm:$0xff] %vm619_vm2, %v572_v14 }
 0x21e   : > { %v671_v15 = vpop.permute.xlu1 %670 }
 0x21f   : > { %718 = vst.msk [vmem:[%s1426_s10] sm:$0xff] %vm619_vm2, %v671_v15 }
 0x222   : > { %v578_v16 = vpop.permute.xlu1 %577 }
 0x223   : > { %623 = vst.msk [vmem:[%s1418_s9 + $0x18] sm:$0xff] %vm619_vm2, %v578_v16  ;;  %v580_v17 = vpop.permute.xlu0 %579 }
 0x224   : > { %624 = vst.msk [vmem:[%s1418_s9 + $0x20] sm:$0xff] %vm619_vm2, %v580_v17 }
 0x226   : > { %v677_v18 = vpop.permute.xlu1 %676 }
 0x227   : > { %721 = vst.msk [vmem:[%s1426_s10 + $0x18] sm:$0xff] %vm619_vm2, %v677_v18 }
 0x22a   : > { %v576_v19 = vpop.permute.xlu1 %575 }
 0x22b   : > { %622 = vst.msk [vmem:[%s1418_s9 + $0x10] sm:$0xff] %vm619_vm2, %v576_v19 }
 0x22e   : > { %v675_v20 = vpop.permute.xlu1 %674 }
 0x22f   : > { %720 = vst.msk [vmem:[%s1426_s10 + $0x10] sm:$0xff] %vm619_vm2, %v675_v20 }
 0x232   : > { %v582_v21 = vpop.permute.xlu1 %581 }
 0x233   : > { %625 = vst.msk [vmem:[%s1418_s9 + $0x28] sm:$0xff] %vm619_vm2, %v582_v21 }
 0x236   : > { %v681_v22 = vpop.permute.xlu1 %680 }
 0x237   : > { %723 = vst.msk [vmem:[%s1426_s10 + $0x28] sm:$0xff] %vm619_vm2, %v681_v22 }
 0x23a   : > { %v679_v23 = vpop.permute.xlu1 %678 }
 0x23b   : > { %722 = vst.msk [vmem:[%s1426_s10 + $0x20] sm:$0xff] %vm619_vm2, %v679_v23 }
 0x23e   : > { %v586_v24 = vpop.permute.xlu1 %585 }
 0x23f   : > { %627 = vst.msk [vmem:[%s1418_s9 + $0x38] sm:$0xff] %vm619_vm2, %v586_v24 }
 0x242   : > { %v685_v25 = vpop.permute.xlu1 %684 }
 0x243   : > { %725 = vst.msk [vmem:[%s1426_s10 + $0x38] sm:$0xff] %vm619_vm2, %v685_v25  ;;  %v695_v26 = vpop.permute.xlu0 %694 }
 0x244   : > { %730 = vst.msk [vmem:[%s1426_s10 + $0x60] sm:$0xff] %vm619_vm2, %v695_v26 }
 0x246   : > { %v584_v27 = vpop.permute.xlu1 %583 }
 0x247   : > { %626 = vst.msk [vmem:[%s1418_s9 + $0x30] sm:$0xff] %vm619_vm2, %v584_v27 }
 0x24a   : > { %v683_v28 = vpop.permute.xlu1 %682 }
 0x24b   : > { %724 = vst.msk [vmem:[%s1426_s10 + $0x30] sm:$0xff] %vm619_vm2, %v683_v28  ;;  %v699_v29 = vpop.permute.xlu0 %698 }
 0x24c   : > { %732 = vst.msk [vmem:[%s1426_s10 + $0x70] sm:$0xff] %vm619_vm2, %v699_v29 }
 0x24e   : > { %v590_v30 = vpop.permute.xlu1 %589 }
 0x24f   : > { %629 = vst.msk [vmem:[%s1418_s9 + $0x48] sm:$0xff] %vm619_vm2, %v590_v30 }
 0x252   : > { %v689_v31 = vpop.permute.xlu1 %688 }
 0x253   : > { %727 = vst.msk [vmem:[%s1426_s10 + $0x48] sm:$0xff] %vm619_vm2, %v689_v31 }
 0x256   : > { %v588_v32 = vpop.permute.xlu1 %587 }
 0x257   : > { %628 = vst.msk [vmem:[%s1418_s9 + $0x40] sm:$0xff] %vm619_vm2, %v588_v32 }
 0x25a   : > { %v687_v33 = vpop.permute.xlu1 %686 }
 0x25b   : > { %726 = vst.msk [vmem:[%s1426_s10 + $0x40] sm:$0xff] %vm619_vm2, %v687_v33 }
 0x25e   : > { %v594_v34 = vpop.permute.xlu1 %593 }
 0x25f   : > { %631 = vst.msk [vmem:[%s1418_s9 + $0x58] sm:$0xff] %vm619_vm2, %v594_v34 }
 0x262   : > { %v693_v35 = vpop.permute.xlu1 %692 }
 0x263   : > { %729 = vst.msk [vmem:[%s1426_s10 + $0x58] sm:$0xff] %vm619_vm2, %v693_v35 }
 0x266   : > { %v592_v36 = vpop.permute.xlu1 %591 }
 0x267   : > { %630 = vst.msk [vmem:[%s1418_s9 + $0x50] sm:$0xff] %vm619_vm2, %v592_v36 }
 0x26a   : > { %v691_v37 = vpop.permute.xlu1 %690 }
 0x26b   : > { %728 = vst.msk [vmem:[%s1426_s10 + $0x50] sm:$0xff] %vm619_vm2, %v691_v37 }
 0x26e   : > { %v598_v38 = vpop.permute.xlu1 %597 }
 0x26f   : > { %633 = vst.msk [vmem:[%s1418_s9 + $0x68] sm:$0xff] %vm619_vm2, %v598_v38 }
 0x272   : > { %v697_v39 = vpop.permute.xlu1 %696 }
 0x273   : > { %731 = vst.msk [vmem:[%s1426_s10 + $0x68] sm:$0xff] %vm619_vm2, %v697_v39 }
 0x276   : > { %v596_v40 = vpop.permute.xlu1 %595 }
 0x277   : > { %632 = vst.msk [vmem:[%s1418_s9 + $0x60] sm:$0xff] %vm619_vm2, %v596_v40 }
 0x27a   : > { %v602_v41 = vpop.permute.xlu1 %601 }
 0x27b   : > { %635 = vst.msk [vmem:[%s1418_s9 + $0x78] sm:$0xff] %vm619_vm2, %v602_v41 }
 0x27e   : > { %v600_v42 = vpop.permute.xlu1 %599 }
 0x27f   : > { %634 = vst.msk [vmem:[%s1418_s9 + $0x70] sm:$0xff] %vm619_vm2, %v600_v42 }
 0x282   : > { %v701_v43 = vpop.permute.xlu1 %700 }
 0x283   : > { %733 = vst.msk [vmem:[%s1426_s10 + $0x78] sm:$0xff] %vm619_vm2, %v701_v43 }
 0x284 PF: > { %p17_p13 = scmp.ge.s32.totalorder %s1178_s23, 4   ;;  %s1518_s18 = smov %s1111_s19 }
 0x285   : > { %s1519_s19 = smov %s1115_s20  ;;  %s1520_s20 = smov %s1188_s26 }
 0x286   : > { %s1521_s21 = smov %s1178_s23  ;;  %19 = sbr.rel (!%p17_p13) target bundleno = 4 (0x4), region = 101 }
 0x28d   :  { %790 = vsyncpa [#allocation3], 1 }
 0x28e   :  { %792 = vsyncpa [#allocation3 + $0x1], 1 }
 0x28f   :  { %793 = vsyncpa [#allocation4], 1 }
 0x290   :  { %795 = vsyncpa [#allocation4 + $0x1], 1 }

</bundles_post_ra>
